<compile_context>
chip_gen: v7x
topology: tpu7x:2x2x1
jax: 0.10.0
libtpu: 0.0.40
codegen_flags: <defaults>
</compile_context>

<pallas_src>
import jax
import jax.numpy as jnp
from jax.experimental import pallas as pl
from jax.experimental.pallas import tpu as pltpu


def _postprocess_kernel(x_ref, scores_ref, pyr_ref):
    # x_ref:      (1, 5, TN) channel-first tile of input channels 4..8
    #             row 0 = box_scores, 1 = class_scores,
    #             row 2 = pitch raw,  3 = yaw raw, 4 = roll raw
    # scores_ref: (1, 1, TN)
    # pyr_ref:    (1, 3, TN) channel-first pitch / yaw / roll
    box_s = x_ref[:, 0:1, :]
    cls_s = x_ref[:, 1:2, :]
    scores_ref[...] = jnp.sqrt(box_s * cls_s)
    # Direct sub-view stores — avoids building a temporary via sublane concat.
    pyr_ref[:, 0:1, :] = (x_ref[:, 2:3, :] - 0.5) * 180.0
    pyr_ref[:, 1:2, :] = (x_ref[:, 3:4, :] - 0.5) * 360.0
    pyr_ref[:, 2:3, :] = (x_ref[:, 4:5, :] - 0.5) * 180.0


def postprocess(x, *, tn_max: int = 32768):
    """x: [B, N, C] with C >= 9.  Returns (boxes [B,N,4], scores [B,1,N],
    pitch_yaw_roll [B,N,3]) matching the PyTorch module."""
    B, N, C = x.shape
    assert C >= 9, "expected at least 9 features in last dim"

    # Pure passthrough: boxes never touch the kernel.
    boxes = x[..., :4]

    # Channel-first relayout of the 5 channels the kernel actually consumes.
    xcf = jnp.transpose(x[..., 4:9], (0, 2, 1))            # [B, 5, N]

    # Tile N: TN is a multiple of 128, as large as possible (streaming kernel).
    n_aligned = ((N + 127) // 128) * 128
    TN = min(tn_max, n_aligned)
    # v7x: keep >= 2 parallel grid steps when B == 1 so both TensorCores work.
    if B == 1 and n_aligned <= TN and TN >= 256:
        TN = ((TN // 2 + 127) // 128) * 128
    Np = ((n_aligned + TN - 1) // TN) * TN
    if Np != N:
        # Zero padding is safe: sqrt(0*0) = 0, angles sliced off afterwards.
        xcf = jnp.pad(xcf, ((0, 0), (0, 0), (0, Np - N)))

    grid = (B, Np // TN)

    scores_p, pyr_cf_p = pl.pallas_call(
        _postprocess_kernel,
        out_shape=(
            jax.ShapeDtypeStruct((B, 1, Np), x.dtype),
            jax.ShapeDtypeStruct((B, 3, Np), x.dtype),
        ),
        grid_spec=pltpu.PrefetchScalarGridSpec(
            num_scalar_prefetch=0,
            grid=grid,
            in_specs=[pl.BlockSpec((1, 5, TN), lambda b, j: (b, 0, j))],
            out_specs=[
                pl.BlockSpec((1, 1, TN), lambda b, j: (b, 0, j)),
                pl.BlockSpec((1, 3, TN), lambda b, j: (b, 0, j)),
            ],
        ),
        compiler_params=pltpu.CompilerParams(
            dimension_semantics=("parallel", "parallel"),
        ),
    )(xcf)

    scores = scores_p if Np == N else scores_p[..., :N]    # [B, 1, N]
    pyr = jnp.transpose(pyr_cf_p[:, :, :N], (0, 2, 1))     # [B, N, 3]
    return boxes, scores, pyr


def postprocess_ref(x):
    # Pure-JAX reference mirroring the PyTorch forward.
    boxes = x[..., :4]
    box_scores = x[..., 4:5]
    class_scores = x[..., 5:6]
    pitch = (x[..., 6:7] - 0.5) * 180.0
    yaw = (x[..., 7:8] - 0.5) * 360.0
    roll = (x[..., 8:9] - 0.5) * 180.0
    pyr = jnp.concatenate([pitch, yaw, roll], axis=2)
    scores = jnp.sqrt(box_scores * class_scores)
    scores = jnp.transpose(scores, (0, 2, 1))
    return boxes, scores, pyr


if __name__ == "__main__":
    key = jax.random.PRNGKey(0)
    B, N, C = 2, 16, 9
    # Keep values in (0, 1) so sqrt is well-defined (sigmoid-activated scores).
    x = jax.random.uniform(key, (B, N, C), dtype=jnp.float32,
                           minval=0.01, maxval=0.99)

    boxes, scores, pyr = postprocess(x)
    jax.block_until_ready((boxes, scores, pyr))

    boxes_r, scores_r, pyr_r = postprocess_ref(x)
    assert boxes.shape == (B, N, 4)
    assert scores.shape == (B, 1, N)
    assert pyr.shape == (B, N, 3)
    assert jnp.allclose(boxes, boxes_r, atol=1e-6)
    assert jnp.allclose(scores, scores_r, atol=1e-5)
    assert jnp.allclose(pyr, pyr_r, atol=1e-4)

    print("KERNEL_OK")
</pallas_src>

<mosaic_0001>
module attributes {stable_mosaic.version = 11 : i64} {
  func.func @_postprocess_kernel(%arg0: i32, %arg1: i32, %arg2: memref<1x5x128xf32, #tpu.memory_space<vmem>>, %arg3: memref<1x1x128xf32, #tpu.memory_space<vmem>>, %arg4: memref<1x3x128xf32, #tpu.memory_space<vmem>>) attributes {dimension_semantics = [#tpu.dimension_semantics<parallel>, #tpu.dimension_semantics<parallel>], iteration_bounds = array<i64: 2, 1>, scalar_prefetch = 0 : i64, scratch_operands = 0 : i64, tpu.core_type = #tpu.core_type<tc>, window_params = [{transform_indices = @transform_0, window_bounds = array<i64: 1, 5, 128>}, {transform_indices = @transform_1, window_bounds = array<i64: 1, 1, 128>}, {transform_indices = @transform_2, window_bounds = array<i64: 1, 3, 128>}]} {
    %c0 = arith.constant 0 : index
    %c0_0 = arith.constant 0 : index
    %c0_1 = arith.constant 0 : index
    %0 = vector.load %arg2[%c0, %c0_0, %c0_1] : memref<1x5x128xf32, #tpu.memory_space<vmem>>, vector<1x1x128xf32>
    %c0_2 = arith.constant 0 : index
    %c1 = arith.constant 1 : index
    %c0_3 = arith.constant 0 : index
    %1 = vector.load %arg2[%c0_2, %c1, %c0_3] : memref<1x5x128xf32, #tpu.memory_space<vmem>>, vector<1x1x128xf32>
    %2 = arith.mulf %0, %1 : vector<1x1x128xf32>
    %3 = math.sqrt %2 : vector<1x1x128xf32>
    %c0_4 = arith.constant 0 : index
    %c0_5 = arith.constant 0 : index
    %c0_6 = arith.constant 0 : index
    %4 = vector.load %arg3[%c0_4, %c0_5, %c0_6] : memref<1x1x128xf32, #tpu.memory_space<vmem>>, vector<1x1x128xf32>
    tpu.vector_store %arg3[%c0_4, %c0_5, %c0_6], %3 {strides = array<i32>} : memref<1x1x128xf32, #tpu.memory_space<vmem>>, vector<1x1x128xf32>,
    %c0_7 = arith.constant 0 : index
    %c2 = arith.constant 2 : index
    %c0_8 = arith.constant 0 : index
    %5 = vector.load %arg2[%c0_7, %c2, %c0_8] : memref<1x5x128xf32, #tpu.memory_space<vmem>>, vector<1x1x128xf32>
    %cst = arith.constant 5.000000e-01 : f32
    %6 = vector.broadcast %cst : f32 to vector<1x1x128xf32>
    %7 = arith.subf %5, %6 : vector<1x1x128xf32>
    %cst_9 = arith.constant 1.800000e+02 : f32
    %8 = vector.broadcast %cst_9 : f32 to vector<1x1x128xf32>
    %9 = arith.mulf %7, %8 : vector<1x1x128xf32>
    %c0_10 = arith.constant 0 : index
    %c0_11 = arith.constant 0 : index
    %c0_12 = arith.constant 0 : index
    %10 = vector.load %arg4[%c0_10, %c0_11, %c0_12] : memref<1x3x128xf32, #tpu.memory_space<vmem>>, vector<1x1x128xf32>
    tpu.vector_store %arg4[%c0_10, %c0_11, %c0_12], %9 {strides = array<i32>} : memref<1x3x128xf32, #tpu.memory_space<vmem>>, vector<1x1x128xf32>,
    %c0_13 = arith.constant 0 : index
    %c3 = arith.constant 3 : index
    %c0_14 = arith.constant 0 : index
    %11 = vector.load %arg2[%c0_13, %c3, %c0_14] : memref<1x5x128xf32, #tpu.memory_space<vmem>>, vector<1x1x128xf32>
    %cst_15 = arith.constant 5.000000e-01 : f32
    %12 = vector.broadcast %cst_15 : f32 to vector<1x1x128xf32>
    %13 = arith.subf %11, %12 : vector<1x1x128xf32>
    %cst_16 = arith.constant 3.600000e+02 : f32
    %14 = vector.broadcast %cst_16 : f32 to vector<1x1x128xf32>
    %15 = arith.mulf %13, %14 : vector<1x1x128xf32>
    %c0_17 = arith.constant 0 : index
    %c1_18 = arith.constant 1 : index
    %c0_19 = arith.constant 0 : index
    %16 = vector.load %arg4[%c0_17, %c1_18, %c0_19] : memref<1x3x128xf32, #tpu.memory_space<vmem>>, vector<1x1x128xf32>
    tpu.vector_store %arg4[%c0_17, %c1_18, %c0_19], %15 {strides = array<i32>} : memref<1x3x128xf32, #tpu.memory_space<vmem>>, vector<1x1x128xf32>,
    %c0_20 = arith.constant 0 : index
    %c4 = arith.constant 4 : index
    %c0_21 = arith.constant 0 : index
    %17 = vector.load %arg2[%c0_20, %c4, %c0_21] : memref<1x5x128xf32, #tpu.memory_space<vmem>>, vector<1x1x128xf32>
    %cst_22 = arith.constant 5.000000e-01 : f32
    %18 = vector.broadcast %cst_22 : f32 to vector<1x1x128xf32>
    %19 = arith.subf %17, %18 : vector<1x1x128xf32>
    %cst_23 = arith.constant 1.800000e+02 : f32
    %20 = vector.broadcast %cst_23 : f32 to vector<1x1x128xf32>
    %21 = arith.mulf %19, %20 : vector<1x1x128xf32>
    %c0_24 = arith.constant 0 : index
    %c2_25 = arith.constant 2 : index
    %c0_26 = arith.constant 0 : index
    %22 = vector.load %arg4[%c0_24, %c2_25, %c0_26] : memref<1x3x128xf32, #tpu.memory_space<vmem>>, vector<1x1x128xf32>
    tpu.vector_store %arg4[%c0_24, %c2_25, %c0_26], %21 {strides = array<i32>} : memref<1x3x128xf32, #tpu.memory_space<vmem>>, vector<1x1x128xf32>,
    return
  }
  func.func @transform_0(%arg0: i32, %arg1: i32) -> (i32, i32, i32) {
    %c0_i32 = arith.constant 0 : i32
    %c0_i32_0 = arith.constant 0 : i32
    return %arg0, %c0_i32, %arg1 : i32, i32, i32
  }
  func.func @transform_1(%arg0: i32, %arg1: i32) -> (i32, i32, i32) {
    %c0_i32 = arith.constant 0 : i32
    %c0_i32_0 = arith.constant 0 : i32
    return %arg0, %c0_i32, %arg1 : i32, i32, i32
  }
  func.func @transform_2(%arg0: i32, %arg1: i32) -> (i32, i32, i32) {
    %c0_i32 = arith.constant 0 : i32
    %c0_i32_0 = arith.constant 0 : i32
    return %arg0, %c0_i32, %arg1 : i32, i32, i32
  }
}

</mosaic_0001>

<bundles_post_ra>
// kernel: tpu_custom_call.1
= control target key start
LH: loop header
LB: loop body
LE: loop exit
PB: predicated region body
PF: predicated region fallthrough
CT: control target
= control target key end

     0   :  { %8 = vsyncpa [#allocation3], 0  ;;  %s608_s0 = inlined_call_operand.vmem [shape: f32[2,5,128], index: 0, kind: input, shape index: {}]   ;;  %s609_s1 = inlined_call_operand.hbm [shape: f32[2,1,128], index: 1, kind: output, shape index: {0}]   ;;  %s610_s2 = inlined_call_operand.vmem [shape: f32[2,3,128], index: 2, kind: output, shape index: {1}]  }
   0x1   :  { %10 = vsyncpa [#allocation3 + $0x1], 0  ;;  %s493_s9 = smov 0   ;;  %s495_s10 = smov 0  }
   0x2   :  { %s497_s11 = smov 0   ;;  %s499_s12 = smov 0  }
   0x3   :  { %s501_s13 = smov 0   ;;  %s503_s14 = smov 0  }
   0x4 LB: > { %s327_s15 = sadd.s32 4294967295, %s475_s14   ;;  %s328_s16 = sadd.s32 4294967294, %s475_s14   ;;  %s475_s14 = sphi %s503_s14, %s16_s14   ;;  %s471_s13 = sphi %s501_s13, %s617_s13   ;;  %s467_s12 = sphi %s499_s12, %s616_s12   ;;  %s463_s11 = sphi %s497_s11, %s615_s11   ;;  %s459_s10 = sphi %s495_s10, %s614_s10   ;;  %s455_s9 = sphi %s493_s9, %s613_s9  }
   0x5   : > { %s28_s17 = sadd.s32 1, %s471_s13  ;;  %s65_s18 = sadd.s32 1, %s463_s11 }
   0x6   : > { %p30_p0 = scmp.ge.s32.totalorder %s28_s17, 2  ;;  %p75_p1 = scmp.ne.s32.totalorder %s463_s11, %s459_s10 }
   0x7   : > { %p76_p2 = scmp.eq.s32.totalorder %s327_s15, 1  ;;  %p81_p3 = scmp.ne.s32.totalorder %s459_s10, %s455_s9 }
   0x8   : > { %s619_s17 = smov (%p30_p0, %s28_s17), 0  ;;  %p82_p5 = scmp.eq.s32.totalorder %s328_s16, 1 }
   0x9   : > { %p533_p4 = por %p76_p2, %p75_p1  ;;  %s60_s20 = ssub.s32 %s471_s13, %s619_s17 }
   0xa   : > { %p331_p6 = scmp.ge.s32.totalorder %s475_s14, 1  ;;  %p63_p7 = scmp.eq.s32.totalorder %s60_s20, 0 }
   0xb   : > { %p540_p8 = por %p82_p5, %p81_p3  ;;  %p138_p9 = scmp.lt.s32.totalorder %s475_s14, 3 }
   0xc   : > { %s546_s22 = scalar_select %p63_p7, %s463_s11, %s65_s18  }
   0xd   : > { %p139_p10 = pnand %p331_p6, %p138_p9 }
   0xe   : > { %p168_p11 = scmp.lt.s32.totalorder (!%p139_p10), %s467_s12, 1  ;;  %s157_s4 = sand.u32 (!%p139_p10), 1, %s459_s10  }
   0xf   : > { %142 = sbr.rel (%p139_p10) target bundleno = 58 (0x3a), region = 24  ;;  %s158_s5 = scalar_lea.vmem (!%p139_p10), [#allocation2], %s157_s4 }
  0x10   : > { %s226_s6 = sshll.u32 (!%p139_p10), %s158_s5, 4  ;;  %s337_s7 = sshll.u32 (!%p139_p10), %s467_s12, 4  ;;  %s558_s6 = int_to_ptr.vmem [resolvable:$true] %s226_s6 }
  0x11   : > { %s563_s16 = scalar_lea.hbm (!%p139_p10), %s609_s1, %s337_s7  ;;  %s206_s18 = scalar_lea.sflag (!%p139_p10), [#allocation3], %s157_s4 }
  0x12   : > { %s397_s20 = scalar_lea.vmem (!%p139_p10), %s558_s6, 16 }
  0x13   : > { %p398_p12 = scmp.ne.s32.totalorder (!%p139_p10), %s558_s6, %s397_s20 }
  0x15   : > { %p399_p13 = pnand (!%p139_p10), %p398_p12, %p533_p4 }
  0x16   : > { %s169_s23 = scalar_select %p168_p11, %s467_s12, 1 }
  0x17   : > { %p400_p0 = pneg %p399_p13  ;;  %s477_s12 = smov [#allocation2]  }
  0x18   : > { %s332_s24 = sshll.u32 %s169_s23, 3  ;;  %s333_s28 = sshll.u32 %s169_s23, 2 }
  0x19   : > { %s174_s27 = scalar_lea.vmem %s608_s0, %s332_s24  ;;  %s181_s3 = scalar_lea.vmem %s610_s2, %s333_s28 }
  0x1a   : > { %v182_v0 = vld [vmem:[%s174_s27] sm:$0x1]  ;;  %v183_v1 = vld [vmem:[%s174_s27 + $0x1] sm:$0x1]  ;;  %v193_v2 = vld [vmem:[%s174_s27 + $0x2] sm:$0x1] }
  0x1b   : > { %v184_v3 = vmul.f32 %v183_v1, %v182_v0  ;;  %v334_v4 = vadd.f32 -0.5, %v193_v2  ;;  %v197_v5 = vld [vmem:[%s174_s27 + $0x3] sm:$0x1]  ;;  %v201_v6 = vld [vmem:[%s174_s27 + $0x4] sm:$0x1]  ;;  %s401_s23 = sshll.u32 %s477_s12, 4  ;;  %s402_s23 = int_to_ptr.vmem [resolvable:$false] %s401_s23 }
  0x1c   : > { %v335_v7 = vadd.f32 -0.5, %v197_v5  ;;  %v336_v8 = vadd.f32 -0.5, %v201_v6  ;;  %s403_s24 = scalar_lea.vmem %s402_s23, 32  ;;  %p404_p1 = scmp.lt.s32.totalorder %s558_s6, %s402_s23 }
  0x1d   : > { %395 = vrsqrt.f32 %v184_v3  ;;  %v195_v9 = vmul.f32 180.0, %v334_v4  ;;  %vm187_vm0 = vcmp.eq.f32.partialorder %v184_v3, inf  ;;  %v190_v13 = vand.u32 2147483648, %v184_v3  ;;  %p405_p2 = scmp.lt.s32.totalorder %s403_s24, %s397_s20 }
  0x1e   : > { %v199_v10 = vmul.f32 360.0, %v335_v7  ;;  %v203_v11 = vmul.f32 180.0, %v336_v8  ;;  %vm189_vm1 = vcmp.eq.f32.partialorder %v184_v3, 0.0 }
  0x1f   : > { %196 = vst [vmem:[%s181_s3] sm:$0x1] %v195_v9  ;;  %p406_p3 = por %p405_p2, %p404_p1 }
  0x20   : > { %200 = vst [vmem:[%s181_s3 + $0x1] sm:$0x1] %v199_v10  ;;  %204 = vst [vmem:[%s181_s3 + $0x2] sm:$0x1] %v203_v11 }
  0x21   : > { %p407_p5 = pnand %p406_p3, %p400_p0 }
  0x27   : > { %v396_v12 = vpop.eup %395 }
  0x28   : > { %v186_v14 = vmul.f32 %v396_v12, %v184_v3 }
  0x2a   : > { %v188_v15 = vsel %vm187_vm0, %v184_v3, %v186_v14 }
  0x2b   : > { %v191_v16 = vsel %vm189_vm1, %v190_v13, %v188_v15 }
  0x2c   : > { %192 = vst [vmem:[%s158_s5] sm:$0x1] %v191_v16 }
  0x2d   : > { %410 = shalt.err (!%p407_p5)
}
  0x2e   : > { %s411_s25 = scalar_lea.hbm %s563_s16, 16  ;;  %s415_s28 = scalar_lea.hbm %s609_s1, 32 }
  0x2f   : > { %p412_p6 = scmp.ne.s32.totalorder %s563_s16, %s411_s25  ;;  %p416_p10 = scmp.lt.u32.totalorder %s563_s16, %s609_s1 }
  0x30   : > { %p417_p11 = scmp.lt.u32.totalorder %s415_s28, %s411_s25  ;;  %p419_p13 = scmp.lt.u32.totalorder %s411_s25, %s563_s16 }
  0x31   : > { %p413_p7 = pnand %p412_p6, %p533_p4 }
  0x32   : > { %p418_p12 = por %p417_p11, %p416_p10 }
  0x33   : > { %p414_p9 = pneg %p413_p7 }
  0x34   : > { %p420_p0 = por %p419_p13, %p418_p12 }
  0x36   : > { %p421_p1 = pnand %p420_p0, %p414_p9 }
  0x38   : > { %424 = shalt.err (!%p421_p1)
}
  0x39   : > { %340 = dma.vmem_to_hbm [thread:$0]  (%p533_p4), %s558_s6, 16, %s563_s16, %s206_s18  }
  0x3a PF: > { %p346_p2 = scmp.ge.s32.totalorder %s475_s14, 2  ;;  %s241_s3 = sand.u32 1, %s455_s9  }
  0x3b   : > { %s242_s4 = scalar_lea.sflag [#allocation3], %s241_s3 }
  0x3c   : > { %p343_p3 = pnand %p346_p2, %p540_p8 }
  0x3e   : > { %450 = dma.done.wait (!%p343_p3), %s242_s4, 16  }
  0x3f   : > { %452 = vsyncadd (!%p343_p3), %s242_s4, 4294967280  ;;  %s16_s14 = sadd.s32 1, %s475_s14   ;;  %s613_s9 = smov %s459_s10 }
  0x40   : > { %p13_p5 = scmp.ge.s32.totalorder %s16_s14, 4   ;;  %s614_s10 = smov %s463_s11 }
  0x41   : > { %s615_s11 = smov %s546_s22  ;;  %s616_s12 = smov %s471_s13 }
  0x42   : > { %s617_s13 = smov %s619_s17  ;;  %15 = sbr.rel (!%p13_p5) target bundleno = 4 (0x4), region = 71 }
  0x49   :  { %256 = vsyncpa [#allocation3], 1 }
  0x4a   :  { %258 = vsyncpa [#allocation3 + $0x1], 1 }

</bundles_post_ra>
